<compile_context>
chip_gen: v5e
topology: v5e:2x2
jax: 0.10.0
libtpu: 0.0.40
codegen_flags: <defaults>
</compile_context>

<pallas_src>
import functools

import jax
import jax.numpy as jnp
from jax import lax
from jax.experimental import pallas as pl
from jax.experimental.pallas import tpu as pltpu


# --------------------------------------------------------------------------------------
# Kernels
# --------------------------------------------------------------------------------------

def _bp_kernel(msg_input_ref, accum_ref, wt_ref, out_ref):
    # wt_ref holds W^T (pre-transposed once in prepare_weight), so this is the standard
    # (M,K) x (K,N) contraction: delta = accum @ W^T, exactly nn.Linear(bias=False).
    delta = jnp.dot(accum_ref[...], wt_ref[...], preferred_element_type=jnp.float32)
    # Elementwise add + relu in f32 (safe on v5e, which has no bf16 VPU path).
    x = msg_input_ref[...].astype(jnp.float32) + delta
    out_ref[...] = jnp.maximum(x, 0.0).astype(out_ref.dtype)


def _bp_kernel_ktiled(msg_input_ref, accum_ref, wt_ref, out_ref, acc_ref):
    # K-tiled variant for hidden sizes whose full weight does not fit the VMEM budget.
    k = pl.program_id(1)

    @pl.when(k == 0)
    def _():
        acc_ref[...] = jnp.zeros_like(acc_ref)

    acc_ref[...] += jnp.dot(accum_ref[...], wt_ref[...],
                            preferred_element_type=jnp.float32)

    @pl.when(k == pl.num_programs(1) - 1)
    def _():
        x = msg_input_ref[...].astype(jnp.float32) + acc_ref[...]
        out_ref[...] = jnp.maximum(x, 0.0).astype(out_ref.dtype)


# --------------------------------------------------------------------------------------
# Layout / budget helpers
# --------------------------------------------------------------------------------------

def _round_up(x, m):
    return ((x + m - 1) // m) * m


def _choose_h_pad(H):
    """Lane-pad H to a multiple of 128 only when the blow-up is small (<= ~15%)."""
    h_pad = _round_up(H, 128)
    if h_pad == H:
        return H
    return h_pad if h_pad * 100 <= 115 * H else H


@functools.lru_cache(maxsize=None)
def _default_vmem_limit_bytes():
    # Per-generation scoped-VMEM budget: ~64 MiB on v5e/v6e (128 MiB physical),
    # ~48 MiB on v7x (64 MiB physical).  Conservative fallback if the query fails.
    phys = 64 * 1024 * 1024
    try:
        phys = int(pltpu.get_tpu_info().vmem_capacity_bytes)
    except Exception:
        pass
    return max(32 * 1024 * 1024, min(int(0.75 * phys), 64 * 1024 * 1024))


@functools.lru_cache(maxsize=None)
def _tensorcores_per_chip():
    # Best-effort: only used to decide whether forcing >=2 grid steps is worthwhile
    # (v7x dual TensorCore).  Falling back to 1 is always safe (no forced split).
    try:
        return max(1, int(getattr(jax.devices()[0], "num_cores", 1)))
    except Exception:
        return 1


# --------------------------------------------------------------------------------------
# Padded-layout prep (call ONCE, outside the BP iteration loop)
# --------------------------------------------------------------------------------------

def prepare_messages(x, h_pad=None):
    """Zero-pad the hidden (lane) dim of a [E, H] message tensor to [E, h_pad]."""
    E, H = x.shape
    h_pad = _choose_h_pad(H) if h_pad is None else h_pad
    if h_pad == H:
        return x
    return jnp.zeros((E, h_pad), x.dtype).at[:, :H].set(x)


def prepare_weight(w_h, h_pad=None, dtype=None):
    """Return W^T, zero-padded to [h_pad, h_pad] and optionally cast. accum @ W^T == W_h(accum)."""
    H_out, H_in = w_h.shape
    assert H_out == H_in, "LoopyBPUpdate uses a square hidden->hidden weight"
    h_pad = _choose_h_pad(H_in) if h_pad is None else h_pad
    w_t = w_h.T  # (in, out): accum @ w_t == accum @ W.T
    if h_pad != H_in:
        w_t = jnp.zeros((h_pad, h_pad), w_h.dtype).at[:H_in, :H_out].set(w_t)
    if dtype is not None:
        w_t = w_t.astype(dtype)
    return w_t


# --------------------------------------------------------------------------------------
# Per-BP-iteration update on already-padded operands (no pad copies, no output slice)
# --------------------------------------------------------------------------------------

def loopy_bp_update_padded(msg_input_p, accum_msg_p, w_t_p, *,
                           max_tile_e=4096, vmem_limit_bytes=None,
                           force_k_tiling=False):
    """msg_input_p, accum_msg_p: [E, H_pad]; w_t_p: [H_pad, H_pad] = W^T. Returns [E, H_pad]."""
    E, H_pad = msg_input_p.shape
    assert accum_msg_p.shape == (E, H_pad)
    assert w_t_p.shape == (H_pad, H_pad)

    msg_dtype = msg_input_p.dtype
    itemsize = jnp.dtype(msg_dtype).itemsize
    w_itemsize = jnp.dtype(w_t_p.dtype).itemsize
    sublane = {2: 16, 1: 32}.get(itemsize, 8)

    if vmem_limit_bytes is None:
        vmem_limit_bytes = _default_vmem_limit_bytes()
    budget_total = int(0.85 * vmem_limit_bytes)  # single headroom hedge (covers f32 temps)

    cores = _tensorcores_per_chip()
    e_cap = _round_up(E, sublane)
    # Force >=2 grid steps only on multi-TensorCore chips (v7x); on v5e/v6e the grid is a
    # serial loop, so splitting small E just doubles the per-step overhead.
    core_cap = _round_up(pl.cdiv(E, cores), sublane) if cores >= 2 else e_cap

    cost = pl.CostEstimate(
        flops=2 * E * H_pad * H_pad,
        bytes_accessed=3 * E * H_pad * itemsize + H_pad * H_pad * w_itemsize,
        transcendentals=0,
    )
    compiler_params_1d = pltpu.CompilerParams(
        dimension_semantics=("parallel",),
        vmem_limit_bytes=vmem_limit_bytes,
    )

    # ---- path selection: full-resident weight vs. K-tiled --------------------------------
    w_bytes = 2 * H_pad * H_pad * w_itemsize      # double-buffered resident weight
    per_row = 2 * 3 * H_pad * itemsize            # 2 pipeline buffers x (msg_in + accum + out)
    budget = budget_total - w_bytes
    min_rows = 8 * sublane

    use_k_tiling = force_k_tiling or (budget < min_rows * per_row)
    if use_k_tiling and (H_pad % 128 != 0 or H_pad < 256):
        # TODO(synk): K-tiling for non-128-divisible hidden sizes would need lane padding
        # first; such sizes have tiny weights anyway, so the resident-weight path is used.
        use_k_tiling = False

    if not use_k_tiling:
        vmem_cap = max(sublane, (max(budget, 0) // per_row) // sublane * sublane)
        tile_e = max(sublane, min(max_tile_e, vmem_cap, e_cap, core_cap))
        grid_e = pl.cdiv(E, tile_e)
        return pl.pallas_call(
            _bp_kernel,
            out_shape=jax.ShapeDtypeStruct((E, H_pad), msg_dtype),
            grid_spec=pltpu.PrefetchScalarGridSpec(
                num_scalar_prefetch=0,
                grid=(grid_e,),
                in_specs=[
                    pl.BlockSpec((tile_e, H_pad), lambda i: (i, 0)),   # msg_input tile
                    pl.BlockSpec((tile_e, H_pad), lambda i: (i, 0)),   # accum_msg tile
                    pl.BlockSpec((H_pad, H_pad), lambda i: (0, 0)),    # W^T, resident
                ],
                out_specs=pl.BlockSpec((tile_e, H_pad), lambda i: (i, 0)),
            ),
            compiler_params=compiler_params_1d,
            cost_estimate=cost,
        )(msg_input_p, accum_msg_p, w_t_p)

    # ---- K-tiled path (large H / small VMEM): accumulate over the hidden contraction ----
    tk = 128
    w_bytes_kt = 2 * tk * H_pad * w_itemsize
    per_row_kt = 2 * (2 * H_pad + tk) * itemsize + H_pad * 4  # streams + f32 accumulator
    budget_kt = budget_total - w_bytes_kt
    vmem_cap = max(sublane, (max(budget_kt, 0) // per_row_kt) // sublane * sublane)
    tile_e = max(sublane, min(max_tile_e, vmem_cap, e_cap, core_cap))
    grid = (pl.cdiv(E, tile_e), H_pad // tk)      # reduction axis last, marked "arbitrary"
    return pl.pallas_call(
        _bp_kernel_ktiled,
        out_shape=jax.ShapeDtypeStruct((E, H_pad), msg_dtype),
        grid_spec=pltpu.PrefetchScalarGridSpec(
            num_scalar_prefetch=0,
            grid=grid,
            in_specs=[
                pl.BlockSpec((tile_e, H_pad), lambda i, k: (i, 0)),    # msg_input (resident over k)
                pl.BlockSpec((tile_e, tk), lambda i, k: (i, k)),       # accum_msg K-slice
                pl.BlockSpec((tk, H_pad), lambda i, k: (k, 0)),        # W^T K-slice
            ],
            out_specs=pl.BlockSpec((tile_e, H_pad), lambda i, k: (i, 0)),
            scratch_shapes=[pltpu.VMEM((tile_e, H_pad), jnp.float32)],
        ),
        compiler_params=pltpu.CompilerParams(
            dimension_semantics=("parallel", "arbitrary"),
            vmem_limit_bytes=vmem_limit_bytes,
        ),
        cost_estimate=cost,
    )(msg_input_p, accum_msg_p, w_t_p)


# --------------------------------------------------------------------------------------
# One-shot convenience wrapper (original module semantics)
# --------------------------------------------------------------------------------------

def loopy_bp_update(msg_input, accum_msg, w_h, **kwargs):
    """msg_input, accum_msg: [E, H]; w_h: [H, H] nn.Linear weight (out, in). Returns [E, H]."""
    E, H = msg_input.shape
    assert accum_msg.shape == (E, H) and w_h.shape == (H, H)
    h_pad = _choose_h_pad(H)
    mi_p = prepare_messages(msg_input, h_pad)
    am_p = prepare_messages(accum_msg, h_pad)
    w_t_p = prepare_weight(w_h, h_pad, dtype=msg_input.dtype)
    out_p = loopy_bp_update_padded(mi_p, am_p, w_t_p, **kwargs)
    return out_p if h_pad == H else out_p[:, :H]


def loopy_bp_update_ref(msg_input, accum_msg, w_h):
    # Pure-JAX reference mirroring the PyTorch forward (high-precision matmul so the
    # comparison isn't dominated by XLA's default-precision f32 matmul).
    delta = jnp.matmul(accum_msg, w_h.T, precision=lax.Precision.HIGHEST)
    return jnp.maximum(msg_input + delta, 0.0)


# --------------------------------------------------------------------------------------
# Demo / self-test
# --------------------------------------------------------------------------------------

if __name__ == "__main__":
    key = jax.random.PRNGKey(0)

    # --- Test 1: module-sized demo (H=32, ragged E=40; no lane padding, masked stores) ---
    H, E = 32, 40
    k1, k2, k3, key = jax.random.split(key, 4)
    w_h = jax.random.normal(k1, (H, H), dtype=jnp.float32) * 0.1
    msg_input = jax.random.normal(k2, (E, H), dtype=jnp.float32)
    accum_msg = jax.random.normal(k3, (E, H), dtype=jnp.float32)

    msg = jax.block_until_ready(loopy_bp_update(msg_input, accum_msg, w_h))
    exp = loopy_bp_update_ref(msg_input, accum_msg, w_h)
    assert msg.shape == (E, H)
    assert jnp.allclose(msg, exp, atol=1e-4, rtol=1e-4), "test 1 mismatch vs reference"

    # --- Test 2: padded-resident BP loop (H=448 -> lane-padded 512, ragged E=50) ---------
    H2, E2, T = 448, 50, 3
    k1, k2, k3, key = jax.random.split(key, 4)
    w2 = jax.random.normal(k1, (H2, H2), dtype=jnp.float32) * 0.02
    mi2 = jax.random.normal(k2, (E2, H2), dtype=jnp.float32)
    am2 = jax.random.normal(k3, (E2, H2), dtype=jnp.float32)

    h_pad = _choose_h_pad(H2)
    mi_p = prepare_messages(mi2, h_pad)            # pad ONCE, outside the BP loop
    wt_p = prepare_weight(w2, h_pad, jnp.float32)  # transpose + pad ONCE
    msg_p = prepare_messages(am2, h_pad)
    step = jax.jit(loopy_bp_update_padded)
    for _ in range(T):                             # messages stay in the padded layout
        msg_p = step(mi_p, msg_p, wt_p)
    msg2 = jax.block_until_ready(msg_p[:, :H2])    # de-pad once at the end

    ref = am2
    for _ in range(T):
        ref = loopy_bp_update_ref(mi2, ref, w2)
    assert jnp.allclose(msg2, ref, atol=1e-3, rtol=1e-3), "test 2 mismatch vs reference"

    # --- Test 3: forced K-tiled path (exercises the large-H / small-VMEM fallback) -------
    H3, E3 = 256, 24
    k1, k2, k3, key = jax.random.split(key, 4)
    w3 = jax.random.normal(k1, (H3, H3), dtype=jnp.float32) * 0.05
    mi3 = jax.random.normal(k2, (E3, H3), dtype=jnp.float32)
    am3 = jax.random.normal(k3, (E3, H3), dtype=jnp.float32)

    msg3 = jax.block_until_ready(loopy_bp_update(mi3, am3, w3, force_k_tiling=True))
    exp3 = loopy_bp_update_ref(mi3, am3, w3)
    assert jnp.allclose(msg3, exp3, atol=1e-4, rtol=1e-4), "test 3 mismatch vs reference"

    print("KERNEL_OK")
</pallas_src>

<mosaic_0001>
module attributes {stable_mosaic.version = 11 : i64} {
  func.func @_bp_kernel(%arg0: i32, %arg1: memref<40x32xf32, #tpu.memory_space<vmem>>, %arg2: memref<40x32xf32, #tpu.memory_space<vmem>>, %arg3: memref<32x32xf32, #tpu.memory_space<vmem>>, %arg4: memref<40x32xf32, #tpu.memory_space<vmem>>) attributes {dimension_semantics = [#tpu.dimension_semantics<parallel>], iteration_bounds = array<i64: 1>, scalar_prefetch = 0 : i64, scratch_operands = 0 : i64, tpu.core_type = #tpu.core_type<tc>, window_params = [{transform_indices = @transform_0, window_bounds = array<i64: 40, 32>}, {transform_indices = @transform_1, window_bounds = array<i64: 40, 32>}, {pipeline_mode = #tpu.pipeline_mode<synchronous>, transform_indices = @transform_2, window_bounds = array<i64: 32, 32>}, {transform_indices = @transform_3, window_bounds = array<i64: 40, 32>}]} {
    %c0 = arith.constant 0 : index
    %c0_0 = arith.constant 0 : index
    %0 = vector.load %arg2[%c0, %c0_0] : memref<40x32xf32, #tpu.memory_space<vmem>>, vector<40x32xf32>
    %c0_1 = arith.constant 0 : index
    %c0_2 = arith.constant 0 : index
    %1 = vector.load %arg3[%c0_1, %c0_2] : memref<32x32xf32, #tpu.memory_space<vmem>>, vector<32x32xf32>
    %cst = arith.constant dense<0.000000e+00> : vector<40x32xf32>
    %2 = tpu.matmul %0, %1, %cst {dimension_numbers = #tpu.dot_dimension_numbers<[1], [0], [0], [1], [0, 0, 1, 1], [], []>} : vector<40x32xf32>, vector<32x32xf32>, vector<40x32xf32> -> vector<40x32xf32>
    %c0_3 = arith.constant 0 : index
    %c0_4 = arith.constant 0 : index
    %3 = vector.load %arg1[%c0_3, %c0_4] : memref<40x32xf32, #tpu.memory_space<vmem>>, vector<40x32xf32>
    %4 = arith.addf %3, %2 : vector<40x32xf32>
    %cst_5 = arith.constant 0.000000e+00 : f32
    %5 = vector.broadcast %cst_5 : f32 to vector<40x32xf32>
    %6 = arith.maximumf %4, %5 : vector<40x32xf32>
    %c0_6 = arith.constant 0 : index
    %c0_7 = arith.constant 0 : index
    %7 = vector.load %arg4[%c0_6, %c0_7] : memref<40x32xf32, #tpu.memory_space<vmem>>, vector<40x32xf32>
    tpu.vector_store %arg4[%c0_6, %c0_7], %6 {strides = array<i32>} : memref<40x32xf32, #tpu.memory_space<vmem>>, vector<40x32xf32>,
    return
  }
  func.func @transform_0(%arg0: i32) -> (i32, i32) {
    %c0_i32 = arith.constant 0 : i32
    %c0_i32_0 = arith.constant 0 : i32
    return %arg0, %c0_i32 : i32, i32
  }
  func.func @transform_1(%arg0: i32) -> (i32, i32) {
    %c0_i32 = arith.constant 0 : i32
    %c0_i32_0 = arith.constant 0 : i32
    return %arg0, %c0_i32 : i32, i32
  }
  func.func @transform_2(%arg0: i32) -> (i32, i32) {
    %c0_i32 = arith.constant 0 : i32
    %c0_i32_0 = arith.constant 0 : i32
    %c0_i32_1 = arith.constant 0 : i32
    return %c0_i32, %c0_i32_0 : i32, i32
  }
  func.func @transform_3(%arg0: i32) -> (i32, i32) {
    %c0_i32 = arith.constant 0 : i32
    %c0_i32_0 = arith.constant 0 : i32
    return %arg0, %c0_i32 : i32, i32
  }
}

</mosaic_0001>

<bundles_post_ra>
// kernel: tpu_custom_call.1
= control target key start
LH: loop header
LB: loop body
LE: loop exit
PB: predicated region body
PF: predicated region fallthrough
CT: control target
= control target key end

     0   :  { %vm23_vm0 = vcmask 261120   ;;  %s199_s2 = inlined_call_operand.vmem [shape: f32[32,32], index: 2, kind: input, shape index: {}]   ;;  %s200_s1 = inlined_call_operand.vmem [shape: f32[40,32], index: 1, kind: input, shape index: {}]   ;;  %s201_s0 = inlined_call_operand.vmem [shape: f32[40,32], index: 0, kind: input, shape index: {}]   ;;  %s202_s3 = inlined_call_operand.vmem [shape: f32[40,32], index: 3, kind: output, shape index: {}]  }
   0x1   :  { %v22_v0 = vld [vmem:[%s199_s2 + $0x18] sm:$0xff]  ;;  %v21_v1 = vld [vmem:[%s199_s2 + $0x10] sm:$0xff]  ;;  %v20_v2 = vld [vmem:[%s199_s2 + $0x8] sm:$0xff] }
   0x2   :  { %102 = vmatpush.msra.mxu3 %v22_v0  ;;  %101 = vmatpush.msra.mxu2 %v22_v0  ;;  %v19_v3 = vld [vmem:[%s199_s2] sm:$0xff]  ;;  %v17_v4 = vld [vmem:[%s200_s1 + $0x18] sm:$0xff]  ;;  %v16_v5 = vld [vmem:[%s200_s1 + $0x10] sm:$0xff] }
   0x3   :  { %51 = vmatpush.msra.mxu0 %v22_v0  ;;  %100 = vmatpush.msra.mxu1 %v22_v0  ;;  %v14_v6 = vld [vmem:[%s200_s1] sm:$0xff]  ;;  %v15_v7 = vld [vmem:[%s200_s1 + $0x8] sm:$0xff]  ;;  %v74_v15 = vld [vmem:[%s201_s0 + $0x18] sm:$0xff] }
   0x4   :  { %105 = vmatpush.msra.mxu3 %v21_v1  ;;  %104 = vmatpush.msra.mxu2 %v21_v1  ;;  %v18_v8 = vld [vmem:[%s200_s1 + $0x20] sm:$0xff]  ;;  %v72_v10 = vld [vmem:[%s201_s0 + $0x8] sm:$0xff]  ;;  %v73_v16 = vld [vmem:[%s201_s0 + $0x10] sm:$0xff] }
   0x5   :  { %52 = vmatpush.msra.mxu0 %v21_v1  ;;  %103 = vmatpush.msra.mxu1 %v21_v1  ;;  %v71_v9 = vld [vmem:[%s201_s0] sm:$0xff] }
   0x6   :  { %108 = vmatpush.msra.mxu3 %v20_v2  ;;  %107 = vmatpush.msra.mxu2 %v20_v2  ;;  %v75_v25 = vld [vmem:[%s201_s0 + $0x20] sm:$0xff] }
   0x7   :  { %53 = vmatpush.msra.mxu0 %v20_v2  ;;  %106 = vmatpush.msra.mxu1 %v20_v2 }
   0x8   :  { %111 = vmatpush.msra.mxu3 %v19_v3  ;;  %110 = vmatpush.msra.mxu2 %v19_v3 }
   0x9   :  { %98 = vmatmul.msk.f32.vlgmr.msra.gmra.mxu3 %vm23_vm0, %v17_v4  ;;  %97 = vmatmul.msk.f32.vlgmr.msra.gmra.mxu2 %vm23_vm0, %v16_v5 }
   0xa   :  { %54 = vmatpush.msra.mxu0 %v19_v3  ;;  %109 = vmatpush.msra.mxu1 %v19_v3 }
   0xb   :  { %95 = vmatmul.msk.f32.vlgmr.msra.gmra.mxu0 %vm23_vm0, %v14_v6  ;;  %96 = vmatmul.msk.f32.vlgmr.msra.gmra.mxu1 %vm23_vm0, %v15_v7 }
  0x11   :  { %99 = vmatmul.msk.f32.gmra.mxu3 %vm23_vm0, %v18_v8 }
  0x88   :  { %v56_v11 = vpop.f32.mrf.mxu0  ;;  %v59_v12 = vpop.f32.mrf.mxu1 }
  0x89   :  { %v76_v13 = vadd.f32 %v71_v9, %v56_v11  ;;  %v77_v14 = vadd.f32 %v72_v10, %v59_v12 }
  0x8b   :  { %v81_v17 = vmax.f32 %v76_v13, 0.0  ;;  %v82_v18 = vmax.f32 %v77_v14, 0.0 }
  0x8c   :  { %v65_v19 = vpop.f32.mrf.mxu3  ;;  %v62_v20 = vpop.f32.mrf.mxu2 }
  0x8d   :  { %v79_v21 = vadd.f32 %v74_v15, %v65_v19  ;;  %86 = vst.msk [vmem:[%s202_s3] sm:$0xff] %vm23_vm0, %v81_v17  ;;  %v78_v22 = vadd.f32 %v73_v16, %v62_v20 }
  0x8e   :  { %87 = vst.msk [vmem:[%s202_s3 + $0x8] sm:$0xff] %vm23_vm0, %v82_v18 }
  0x8f   :  { %v84_v23 = vmax.f32 %v79_v21, 0.0  ;;  %v83_v24 = vmax.f32 %v78_v22, 0.0 }
  0x91   :  { %89 = vst.msk [vmem:[%s202_s3 + $0x18] sm:$0xff] %vm23_vm0, %v84_v23 }
  0x92   :  { %88 = vst.msk [vmem:[%s202_s3 + $0x10] sm:$0xff] %vm23_vm0, %v83_v24 }
  0x94   :  { %v68_v26 = vpop.f32.mrf.mxu3 }
  0x95   :  { %v80_v27 = vadd.f32 %v75_v25, %v68_v26 }
  0x97   :  { %v85_v28 = vmax.f32 %v80_v27, 0.0 }
  0x99   :  { %90 = vst.msk [vmem:[%s202_s3 + $0x20] sm:$0xff] %vm23_vm0, %v85_v28 }

</bundles_post_ra>
